<compile_context>
chip_gen: v5e
topology: v5e:2x2
jax: 0.10.0
libtpu: 0.0.40
codegen_flags: <defaults>
</compile_context>

<pallas_src>
import functools

import jax
import jax.numpy as jnp
import numpy as np
from jax import lax
from jax.experimental import pallas as pl
from jax.experimental.pallas import tpu as pltpu

POOL = 4
_K_ALIGN = 512                      # lane alignment of the streamed K axis
_X_BUF_BUDGET = 6 * 1024 * 1024     # bytes per pipelined x buffer (2x buffered)
_V_RESIDENT_BYTES = 2 * 1024 * 1024  # keep VT fully VMEM-resident below this


# --------------------------------------------------------------------------- #
# Kernel
# --------------------------------------------------------------------------- #
def _ofr_kernel(x_ref,      # VMEM (tile_n, tile_k)         x slab, native dtype
                vt_ref,     # VMEM (grid_k|1, 2, tile_k)    folded weights VT
                c_ref,      # VMEM (1, 2) f32               folded constants
                out_ref,    # VMEM (tile_n, 2) f32          |result|
                acc_ref,    # VMEM scratch (tile_n, 2) f32  accumulator
                *, v_resident):
    k = pl.program_id(1)

    @pl.when(k == 0)
    def _():
        acc_ref[...] = jnp.zeros_like(acc_ref)

    # (2, tile_k) weight tile, same dtype as x.  No upcast of the streamed
    # slab: the MXU accumulates in f32 via preferred_element_type.
    vt = vt_ref[k] if v_resident else vt_ref[0]
    acc_ref[...] += lax.dot_general(
        x_ref[...], vt,
        dimension_numbers=(((1,), (1,)), ((), ())),
        preferred_element_type=jnp.float32)

    @pl.when(k == pl.num_programs(1) - 1)
    def _():
        out_ref[...] = jnp.abs(acc_ref[...] + c_ref[...]).astype(out_ref.dtype)


# --------------------------------------------------------------------------- #
# Weight folding (exact algebra, done once -- keep it off the per-call path)
# --------------------------------------------------------------------------- #
def fold_weights(params, H, W):
    """Collapse conv1x1 -> AvgPool2d(4,4) -> Linear -> AvgPool1d into (VT, c).

    Returns VT (2, 2*H*W) f32 (rows = [pitch, yaw]) and c (1, 2) f32 so that
    forward(x) == | x.reshape(N, 2*H*W) @ VT.T + c |.
    """
    Hp = (H - POOL) // POOL + 1
    Wp = (W - POOL) // POOL + 1
    inv = 1.0 / (POOL * POOL)

    def head(conv_w, conv_b, lin_w, lin_b):
        conv_w = conv_w.astype(jnp.float32)
        conv_b = conv_b.astype(jnp.float32)
        lin_w = lin_w.astype(jnp.float32)
        lin_b = lin_b.astype(jnp.float32)
        # AvgPool1d(F) of Linear: mean_j(x@W^T + b)_j = x @ wbar + bbar
        wbar = jnp.mean(lin_w, axis=0)                         # (F,)
        bbar = jnp.mean(lin_b)                                 # ()
        # Fold AvgPool2d(4,4): spread wbar/16 over each 4x4 window; positions
        # the strided pool never touches get zero weight.
        u2 = jnp.repeat(jnp.repeat(wbar.reshape(Hp, Wp), POOL, axis=0),
                        POOL, axis=1) * inv
        u2 = jnp.pad(u2, ((0, H - Hp * POOL), (0, W - Wp * POOL)))
        u = u2.reshape(H * W)                                  # (H*W,)
        # 1x1 conv channel mix; conv bias contributes conv_b * sum(wbar).
        vec = jnp.concatenate([conv_w[0] * u, conv_w[1] * u])  # (2*H*W,)
        const = conv_b * jnp.sum(wbar) + bbar
        return vec, const

    vp, cp = head(params["conv_pitch_w"], params["conv_pitch_b"],
                  params["lin_pitch_w"], params["lin_pitch_b"])
    vy, cy = head(params["conv_yaw_w"], params["conv_yaw_b"],
                  params["lin_yaw_w"], params["lin_yaw_b"])
    VT = jnp.stack([vp, vy], axis=0)                           # (2, 2*H*W)
    c = jnp.stack([cp, cy]).reshape(1, 2)                      # (1, 2)
    return VT, c


# --------------------------------------------------------------------------- #
# Tile selection (jointly VMEM-budget aware)
# --------------------------------------------------------------------------- #
def _round_up(x, m):
    return ((x + m - 1) // m) * m


def _pick_tile_n(N):
    n8 = _round_up(N, 8)
    if n8 <= 8:
        return 8
    # Largest power of two <= min(256, n8 // 2): sublane aligned, and >= 2
    # batch tiles so the "parallel" axis can shard across v7x's 2 TensorCores.
    cap = min(256, n8 // 2)
    t = 8
    while t * 2 <= cap:
        t *= 2
    return t


def _pick_tile_k(K, tile_n, x_itemsize):
    """Return (k_pad, tile_k): lane-aligned K padding and the largest K tile
    that keeps a single (tile_n, tile_k) x buffer within _X_BUF_BUDGET."""
    k_pad = _round_up(K, _K_ALIGN)
    m = k_pad // _K_ALIGN
    cap_lanes = max(_K_ALIGN, _X_BUF_BUDGET // max(1, tile_n * x_itemsize))
    cap_d = max(1, cap_lanes // _K_ALIGN)
    tile_k = _K_ALIGN
    for cand in range(min(m, cap_d), 0, -1):
        if m % cand == 0:
            tile_k = _K_ALIGN * cand
            break
    return k_pad, tile_k


# --------------------------------------------------------------------------- #
# Wrapper
# --------------------------------------------------------------------------- #
@jax.jit
def optical_flow_regression(x_nchw, vt, c):
    N, C, H, W = x_nchw.shape
    assert C == 2, "OpticalFlowRegression_conv expects 2 input channels"
    K = C * H * W
    assert vt.shape == (2, K)

    x_itemsize = jnp.dtype(x_nchw.dtype).itemsize
    tile_n = _pick_tile_n(N)
    n_pad = _round_up(N, tile_n)
    k_pad, tile_k = _pick_tile_k(K, tile_n, x_itemsize)
    grid_n = n_pad // tile_n
    grid_k = k_pad // tile_k

    # Stream x in its native dtype (bf16 callers halve HBM traffic, notably on
    # v5e).  Zero-pad ragged edges: padded VT columns are zero (exact) and
    # padded batch rows are sliced off afterwards.
    x2d = x_nchw.reshape(N, K)
    if n_pad != N or k_pad != K:
        x2d = jnp.pad(x2d, ((0, n_pad - N), (0, k_pad - K)))

    compute_dtype = x_nchw.dtype
    vt_p = vt.astype(compute_dtype)
    if k_pad != K:
        vt_p = jnp.pad(vt_p, ((0, 0), (0, k_pad - K)))
    # Lane-dense layout: slab g holds the (2, tile_k) VT tile for K step g.
    v3 = vt_p.reshape(2, grid_k, tile_k).transpose(1, 0, 2)

    v_itemsize = jnp.dtype(compute_dtype).itemsize
    v_vmem_bytes = grid_k * 8 * tile_k * v_itemsize     # sublane-padded size
    v_resident = v_vmem_bytes <= _V_RESIDENT_BYTES

    if v_resident:
        # Whole VT stays in VMEM, DMA'd exactly once (constant index_map).
        v_spec = pl.BlockSpec((grid_k, 2, tile_k), lambda i, k: (0, 0, 0))
        v_buf_bytes = v_vmem_bytes
    else:
        v_spec = pl.BlockSpec((1, 2, tile_k), lambda i, k: (k, 0, 0))
        v_buf_bytes = 2 * 8 * tile_k * v_itemsize        # double-buffered

    # Explicit scoped-VMEM limit matching the chosen footprint (+ headroom).
    x_buf_bytes = 2 * tile_n * tile_k * x_itemsize       # double-buffered x
    misc_bytes = (2 * tile_n + tile_n + 8) * 128 * 4     # out (x2) + acc + c
    vmem_limit = int(min(max(x_buf_bytes + v_buf_bytes + misc_bytes + (2 << 20),
                             16 << 20), 48 << 20))

    cost = pl.CostEstimate(
        flops=4 * n_pad * k_pad,
        transcendentals=0,
        bytes_accessed=(n_pad * k_pad * x_itemsize
                        + 2 * k_pad * v_itemsize
                        + n_pad * 2 * 4 + 8))

    kernel = functools.partial(_ofr_kernel, v_resident=v_resident)

    out = pl.pallas_call(
        kernel,
        out_shape=jax.ShapeDtypeStruct((n_pad, 2), jnp.float32),
        grid_spec=pltpu.PrefetchScalarGridSpec(
            num_scalar_prefetch=0,
            grid=(grid_n, grid_k),
            in_specs=[
                pl.BlockSpec((tile_n, tile_k), lambda i, k: (i, k)),  # x slab
                v_spec,                                               # VT
                pl.BlockSpec((1, 2), lambda i, k: (0, 0)),            # c
            ],
            out_specs=pl.BlockSpec((tile_n, 2), lambda i, k: (i, 0)),
            scratch_shapes=[pltpu.VMEM((tile_n, 2), jnp.float32)],
        ),
        compiler_params=pltpu.CompilerParams(
            dimension_semantics=("parallel", "arbitrary"),
            vmem_limit_bytes=vmem_limit),
        cost_estimate=cost,
    )(x2d, v3, c)

    return out[:N]


# --------------------------------------------------------------------------- #
# Pure-JAX reference mirroring the PyTorch forward (non-collapsed).
# --------------------------------------------------------------------------- #
def reference(x_nchw, params):
    N, C, H, W = x_nchw.shape
    Hp = (H - POOL) // POOL + 1
    Wp = (W - POOL) // POOL + 1
    F = Hp * Wp
    x = x_nchw.astype(jnp.float32)

    def head(wc, bc, wl, bl):
        y = wc[0] * x[:, 0] + wc[1] * x[:, 1] + bc                     # (N,H,W)
        pooled = y[:, :Hp * POOL, :Wp * POOL].reshape(
            N, Hp, POOL, Wp, POOL).mean(axis=(2, 4))                   # (N,Hp,Wp)
        flat = pooled.reshape(N, F)
        lin = flat @ wl.T + bl                                         # (N,F)
        return jnp.abs(lin.mean(axis=-1, keepdims=True))               # (N,1)

    op = head(params["conv_pitch_w"], params["conv_pitch_b"],
              params["lin_pitch_w"], params["lin_pitch_b"])
    oy = head(params["conv_yaw_w"], params["conv_yaw_b"],
              params["lin_yaw_w"], params["lin_yaw_b"])
    return jnp.concatenate([op, oy], axis=-1)


if __name__ == "__main__":
    N, C, H, W = 2, 2, 16, 16
    Hp = (H - POOL) // POOL + 1
    Wp = (W - POOL) // POOL + 1
    F = Hp * Wp

    key = jax.random.PRNGKey(0)
    ks = jax.random.split(key, 9)

    params = {
        "conv_pitch_w": jax.random.normal(ks[0], (2,), jnp.float32) * 0.5,
        "conv_pitch_b": jax.random.normal(ks[1], (), jnp.float32) * 0.1,
        "conv_yaw_w":   jax.random.normal(ks[2], (2,), jnp.float32) * 0.5,
        "conv_yaw_b":   jax.random.normal(ks[3], (), jnp.float32) * 0.1,
        "lin_pitch_w":  jax.random.normal(ks[4], (F, F), jnp.float32) / jnp.sqrt(F),
        "lin_pitch_b":  jax.random.normal(ks[5], (F,), jnp.float32) * 0.1,
        "lin_yaw_w":    jax.random.normal(ks[6], (F, F), jnp.float32) / jnp.sqrt(F),
        "lin_yaw_b":    jax.random.normal(ks[7], (F,), jnp.float32) * 0.1,
    }

    x = jax.random.normal(ks[8], (N, C, H, W), jnp.float32)

    # Fold the weights once (off the per-call critical path), then run.
    VT, c = fold_weights(params, H, W)
    VT = jax.block_until_ready(VT)
    c = jax.block_until_ready(c)

    out = jax.block_until_ready(optical_flow_regression(x, VT, c))
    ref = jax.block_until_ready(reference(x, params))

    assert out.shape == (N, 2), f"bad output shape {out.shape}"
    np.testing.assert_allclose(np.asarray(out), np.asarray(ref),
                               rtol=1e-4, atol=1e-5)
    print("KERNEL_OK")
</pallas_src>

<mosaic_0001>
module attributes {stable_mosaic.version = 11 : i64} {
  func.func @_ofr_kernel(%arg0: i32, %arg1: i32, %arg2: memref<8x512xf32, #tpu.memory_space<vmem>>, %arg3: memref<1x2x512xf32, #tpu.memory_space<vmem>>, %arg4: memref<1x2xf32, #tpu.memory_space<vmem>>, %arg5: memref<8x2xf32, #tpu.memory_space<vmem>>, %arg6: memref<8x2xf32, #tpu.memory_space<vmem>>) attributes {dimension_semantics = [#tpu.dimension_semantics<parallel>, #tpu.dimension_semantics<arbitrary>], iteration_bounds = array<i64: 1, 1>, scalar_prefetch = 0 : i64, scratch_operands = 1 : i64, tpu.core_type = #tpu.core_type<tc>, window_params = [{transform_indices = @transform_0, window_bounds = array<i64: 8, 512>}, {pipeline_mode = #tpu.pipeline_mode<synchronous>, transform_indices = @transform_1, window_bounds = array<i64: 1, 2, 512>}, {pipeline_mode = #tpu.pipeline_mode<synchronous>, transform_indices = @transform_2, window_bounds = array<i64: 1, 2>}, {transform_indices = @transform_3, window_bounds = array<i64: 8, 2>}]} {
    %c0_i32 = arith.constant 0 : i32
    %0 = arith.cmpi eq, %arg1, %c0_i32 : i32
    %1 = arith.extui %0 : i1 to i32
    %c0_i32_0 = arith.constant 0 : i32
    %2 = arith.cmpi ne, %1, %c0_i32_0 : i32
    scf.if %2 {
      %cst_10 = arith.constant 0.000000e+00 : f32
      %14 = vector.broadcast %cst_10 : f32 to vector<8x2xf32>
      %c0_11 = arith.constant 0 : index
      %c0_12 = arith.constant 0 : index
      %15 = vector.load %arg6[%c0_11, %c0_12] : memref<8x2xf32, #tpu.memory_space<vmem>>, vector<8x2xf32>
      tpu.vector_store %arg6[%c0_11, %c0_12], %14 {strides = array<i32>} : memref<8x2xf32, #tpu.memory_space<vmem>>, vector<8x2xf32>,
    } else {
    }
    %3 = arith.index_cast %arg1 : i32 to index
    %c0 = arith.constant 0 : index
    %c0_1 = arith.constant 0 : index
    %4 = vector.load %arg3[%3, %c0, %c0_1] : memref<1x2x512xf32, #tpu.memory_space<vmem>>, vector<1x2x512xf32>
    %5 = vector.shape_cast %4 : vector<1x2x512xf32> to vector<2x512xf32>
    %c0_2 = arith.constant 0 : index
    %c0_3 = arith.constant 0 : index
    %6 = vector.load %arg6[%c0_2, %c0_3] : memref<8x2xf32, #tpu.memory_space<vmem>>, vector<8x2xf32>
    %c0_4 = arith.constant 0 : index
    %c0_5 = arith.constant 0 : index
    %7 = vector.load %arg2[%c0_4, %c0_5] : memref<8x512xf32, #tpu.memory_space<vmem>>, vector<8x512xf32>
    %cst = arith.constant dense<0.000000e+00> : vector<8x2xf32>
    %8 = tpu.matmul %7, %5, %cst {dimension_numbers = #tpu.dot_dimension_numbers<[1], [1], [0], [0], [0, 0, 1, 0], [], []>} : vector<8x512xf32>, vector<2x512xf32>, vector<8x2xf32> -> vector<8x2xf32>
    %9 = arith.addf %6, %8 : vector<8x2xf32>
    %c0_6 = arith.constant 0 : index
    %c0_7 = arith.constant 0 : index
    %10 = vector.load %arg6[%c0_6, %c0_7] : memref<8x2xf32, #tpu.memory_space<vmem>>, vector<8x2xf32>
    tpu.vector_store %arg6[%c0_6, %c0_7], %9 {strides = array<i32>} : memref<8x2xf32, #tpu.memory_space<vmem>>, vector<8x2xf32>,
    %c0_i32_8 = arith.constant 0 : i32
    %11 = arith.cmpi eq, %arg1, %c0_i32_8 : i32
    %12 = arith.extui %11 : i1 to i32
    %c0_i32_9 = arith.constant 0 : i32
    %13 = arith.cmpi ne, %12, %c0_i32_9 : i32
    scf.if %13 {
      %c0_10 = arith.constant 0 : index
      %c0_11 = arith.constant 0 : index
      %14 = vector.load %arg6[%c0_10, %c0_11] : memref<8x2xf32, #tpu.memory_space<vmem>>, vector<8x2xf32>
      %c0_12 = arith.constant 0 : index
      %c0_13 = arith.constant 0 : index
      %15 = vector.load %arg4[%c0_12, %c0_13] : memref<1x2xf32, #tpu.memory_space<vmem>>, vector<1x2xf32>
      %16 = vector.broadcast %15 : vector<1x2xf32> to vector<8x2xf32>
      %17 = arith.addf %14, %16 : vector<8x2xf32>
      %18 = math.absf %17 : vector<8x2xf32>
      %c0_14 = arith.constant 0 : index
      %c0_15 = arith.constant 0 : index
      %19 = vector.load %arg5[%c0_14, %c0_15] : memref<8x2xf32, #tpu.memory_space<vmem>>, vector<8x2xf32>
      tpu.vector_store %arg5[%c0_14, %c0_15], %18 {strides = array<i32>} : memref<8x2xf32, #tpu.memory_space<vmem>>, vector<8x2xf32>,
    } else {
    }
    return
  }
  func.func @transform_0(%arg0: i32, %arg1: i32) -> (i32, i32) {
    %c0_i32 = arith.constant 0 : i32
    return %arg0, %arg1 : i32, i32
  }
  func.func @transform_1(%arg0: i32, %arg1: i32) -> (i32, i32, i32) {
    %c0_i32 = arith.constant 0 : i32
    %c0_i32_0 = arith.constant 0 : i32
    %c0_i32_1 = arith.constant 0 : i32
    %c0_i32_2 = arith.constant 0 : i32
    return %c0_i32, %c0_i32_0, %c0_i32_1 : i32, i32, i32
  }
  func.func @transform_2(%arg0: i32, %arg1: i32) -> (i32, i32) {
    %c0_i32 = arith.constant 0 : i32
    %c0_i32_0 = arith.constant 0 : i32
    %c0_i32_1 = arith.constant 0 : i32
    return %c0_i32, %c0_i32_0 : i32, i32
  }
  func.func @transform_3(%arg0: i32, %arg1: i32) -> (i32, i32) {
    %c0_i32 = arith.constant 0 : i32
    %c0_i32_0 = arith.constant 0 : i32
    return %arg0, %c0_i32 : i32, i32
  }
}

</mosaic_0001>

<bundles_post_ra>
// kernel: optical_flow_regression.1
= control target key start
LH: loop header
LB: loop body
LE: loop exit
PB: predicated region body
PF: predicated region fallthrough
CT: control target
= control target key end

     0   :  { %vm18_vm0 = vcmask 15360   ;;  %v139_v9 = vmov 0.0   ;;  %s184_s1 = inlined_call_operand.vmem [shape: f32[1,2,512], index: 1, kind: input, shape index: {}]   ;;  %s185_s0 = inlined_call_operand.vmem [shape: f32[8,512], index: 0, kind: input, shape index: {}]   ;;  %s186_s2 = inlined_call_operand.vmem [shape: f32[1,2], index: 2, kind: input, shape index: {}]   ;;  %s187_s3 = inlined_call_operand.vmem [shape: f32[8,2], index: 3, kind: output, shape index: {}]  }
   0x1   :  { %v23_v0 = vld [vmem:[%s184_s1] sm:$0xff]  ;;  %v27_v1 = vld [vmem:[%s185_s0 + $0x10] sm:$0xff]  ;;  %v28_v2 = vld [vmem:[%s185_s0 + $0x18] sm:$0xff]  ;;  %19 = vst.msk [vmem:[#allocation2] sm:$0xff] %vm18_vm0, %v139_v9 }
   0x2   :  { %30 = vst [vmem:[#allocation1] ss:$4 sm:$0xff] %v23_v0  ;;  %v25_v7 = vld [vmem:[%s185_s0] sm:$0xff]  ;;  %v26_v8 = vld [vmem:[%s185_s0 + $0x8] sm:$0xff] }
   0x3   :  { %v138_v19 = vld [vmem:[%s186_s2] ss:$0 sm:$0xff] }
   0x8   :  { %v24_v16 = vld [vmem:[#allocation2] sm:$0xff] }
   0x9   :  { %v33_v3 = vld.sshfl [vmem:[#allocation1 + $0x10] sm:$0xff pattern:$0x73625140]  ;;  %v34_v4 = vld.sshfl [vmem:[#allocation1 + $0x18] sm:$0xff pattern:$0x73625140] }
   0xa   :  { %94 = vmatpush.xpose.msra.mxu2 %v33_v3  ;;  %114 = vmatpush.xpose.msra.mxu3 %v34_v4  ;;  %v31_v5 = vld.sshfl [vmem:[#allocation1] sm:$0xff pattern:$0x73625140]  ;;  %v32_v6 = vld.sshfl [vmem:[#allocation1 + $0x8] sm:$0xff pattern:$0x73625140] }
   0xb   :  { %54 = vmatpush.xpose.msra.mxu0 %v31_v5  ;;  %74 = vmatpush.xpose.msra.mxu1 %v32_v6 }
   0xd   :  { %95 = vmatmul.f32.vlgmr.msra.gmra.mxu2 %v27_v1  ;;  %115 = vmatmul.f32.vlgmr.msra.gmra.mxu3 %v28_v2 }
   0xe   :  { %55 = vmatmul.f32.vlgmr.msra.gmra.mxu0 %v25_v7  ;;  %75 = vmatmul.f32.vlgmr.msra.gmra.mxu1 %v26_v8 }
  0x8b   :  { %v56_v10 = vpop.f32.mrf.mxu0  ;;  %v76_v11 = vpop.f32.mrf.mxu1 }
  0x8c   :  { %v77_v12 = vadd.f32 %v76_v11, %v56_v10 }
  0x90   :  { %v96_v13 = vpop.f32.mrf.mxu2  ;;  %v116_v14 = vpop.f32.mrf.mxu3 }
  0x91   :  { %v97_v15 = vadd.f32 %v96_v13, %v77_v12 }
  0x93   :  { %v117_v17 = vadd.f32 %v116_v14, %v97_v15 }
  0x95   :  { %v119_v18 = vadd.f32 %v117_v17, %v24_v16 }
  0x97   :  { %121 = vst.msk [vmem:[#allocation2] sm:$0xff] %vm18_vm0, %v119_v18 }
  0x9e   :  { %v125_v20 = vld [vmem:[#allocation2] sm:$0xff] }
  0x9f   :  { %v130_v21 = vadd.f32 %v138_v19, %v125_v20 }
  0xa1   :  { %v131_v22 = vand.u32 2147483647, %v130_v21 }
  0xa3   :  { %132 = vst.msk [vmem:[%s187_s3] sm:$0xff] %vm18_vm0, %v131_v22 }

</bundles_post_ra>
